<compile_context>
chip_gen: v7x
topology: tpu7x:2x2x1
jax: 0.10.0
libtpu: 0.0.40
codegen_flags: <defaults>
</compile_context>

<pallas_src>
import functools

import jax
import jax.numpy as jnp
from jax.experimental import pallas as pl
from jax.experimental.pallas import tpu as pltpu


def _round_up(x, m):
    return ((x + m - 1) // m) * m


# --------------------------------------------------------------------------- #
# Kernels
# --------------------------------------------------------------------------- #
def _ensemble_fc_kernel_single_k(x_ref, w_ref, b_ref, o_ref):
    """One step covers the whole contraction dim: no accumulator, no zero-init.

    x_ref: (eb, tb, tk)  w_ref: (eb, tk, tn)  b_ref: (eb, 1, tn)  o_ref: (eb, tb, tn)
    (also used by the small no-padding path with eb=E, tb=B, tk=IN, tn=OUT)
    """
    eb = x_ref.shape[0]
    for e in range(eb):  # static unroll: per-member 2-D MXU matmul
        prod = jnp.dot(x_ref[e], w_ref[e], preferred_element_type=jnp.float32)
        o_ref[e] = (prod + b_ref[e].astype(jnp.float32)).astype(o_ref.dtype)


def _ensemble_fc_kernel_multi_k_f32(x_ref, w_ref, b_ref, o_ref):
    """K-tiled path, f32 output: accumulate directly into the resident o_ref block."""
    k = pl.program_id(3)
    eb = x_ref.shape[0]
    prods = [
        jnp.dot(x_ref[e], w_ref[e], preferred_element_type=jnp.float32)
        for e in range(eb)
    ]

    @pl.when(k == 0)
    def _():
        for e in range(eb):
            o_ref[e] = prods[e]

    @pl.when(k != 0)
    def _():
        for e in range(eb):
            o_ref[e] = o_ref[e] + prods[e]

    @pl.when(k == pl.num_programs(3) - 1)
    def _():
        o_ref[...] = o_ref[...] + b_ref[...].astype(jnp.float32)


def _ensemble_fc_kernel_multi_k_acc(x_ref, w_ref, b_ref, o_ref, acc_ref):
    """K-tiled path, non-f32 output: f32 VMEM accumulator, cast only at the end."""
    k = pl.program_id(3)
    eb = x_ref.shape[0]
    prods = [
        jnp.dot(x_ref[e], w_ref[e], preferred_element_type=jnp.float32)
        for e in range(eb)
    ]

    @pl.when(k == 0)
    def _():
        for e in range(eb):
            acc_ref[e] = prods[e]

    @pl.when(k != 0)
    def _():
        for e in range(eb):
            acc_ref[e] = acc_ref[e] + prods[e]

    @pl.when(k == pl.num_programs(3) - 1)
    def _():
        o_ref[...] = (acc_ref[...] + b_ref[...].astype(jnp.float32)).astype(o_ref.dtype)


# --------------------------------------------------------------------------- #
# Wrappers
# --------------------------------------------------------------------------- #
def _small_path(x, weight, bias, out_dtype):
    """Whole problem in one full-array-block kernel invocation: no padding at all."""
    E, B, IN = x.shape
    OUT = weight.shape[2]
    bytes_accessed = (
        x.size * x.dtype.itemsize
        + weight.size * weight.dtype.itemsize
        + bias.size * bias.dtype.itemsize
        + E * B * OUT * jnp.dtype(out_dtype).itemsize
    )
    return pl.pallas_call(
        _ensemble_fc_kernel_single_k,
        out_shape=jax.ShapeDtypeStruct((E, B, OUT), out_dtype),
        cost_estimate=pl.CostEstimate(
            flops=2 * E * B * IN * OUT,
            transcendentals=0,
            bytes_accessed=bytes_accessed,
        ),
    )(x, weight, bias.reshape(E, 1, OUT))


def _general_path(x, weight, bias, out_dtype):
    E, B, IN = x.shape
    OUT = weight.shape[2]
    in_isz = x.dtype.itemsize
    out_isz = jnp.dtype(out_dtype).itemsize

    # Dtype-aware sublane multiple (sub-32-bit dtypes pack along sublanes).
    sub = {4: 8, 2: 16, 1: 32}.get(in_isz, 8)

    Bp0 = _round_up(B, sub)
    INp0 = _round_up(IN, 128)
    OUTp0 = _round_up(OUT, 128)

    # Large, MXU-friendly tiles. Double-buffered f32 footprint ~11 MiB max, well
    # inside every chip's VMEM; tb/tn are 256-multiples whenever dims allow.
    tb = min(Bp0, 512)
    tn = min(OUTp0, 512)
    tk = min(INp0, 1024)

    Bp = _round_up(Bp0, tb)
    INp = _round_up(INp0, tk)
    OUTp = _round_up(OUTp0, tn)

    # Pack several ensemble members per grid step when one member is a single small
    # tile (amortizes ~0.35us/step grid overhead); keep >= 2 E-steps for v7x's two
    # TensorCores and cap the static unroll / VMEM footprint.
    single_tile_member = (Bp0 <= tb) and (OUTp0 <= tn) and (INp0 <= tk)
    if E > 1 and single_tile_member:
        per_member_bytes = (Bp * INp + INp * OUTp + 2 * Bp * OUTp) * 4
        eb_cap = max(1, (8 << 20) // max(per_member_bytes, 1))
        eb = max(1, min(-(-E // 2), eb_cap, 8))
    else:
        eb = 1
    n_eblk = -(-E // eb)
    Ep = eb * n_eblk

    # Zero-pad: zeros along IN contribute nothing; padded E/B/OUT are sliced off.
    x_p = jnp.pad(x, ((0, Ep - E), (0, Bp - B), (0, INp - IN)))
    w_p = jnp.pad(weight, ((0, Ep - E), (0, INp - IN), (0, OUTp - OUT)))
    b_p = jnp.pad(bias, ((0, Ep - E), (0, OUTp - OUT))).reshape(Ep, 1, OUTp)

    n_k = INp // tk
    multi_k = n_k > 1

    block_bytes = eb * (tb * tk * in_isz + tk * tn * in_isz + tn * 4 + tb * tn * out_isz)
    vmem_needed = 2 * block_bytes  # double-buffered in/out tiles
    if multi_k and out_dtype != jnp.float32:
        vmem_needed += eb * tb * tn * 4  # f32 scratch accumulator
    # Cap at 48 MiB: safe on v7x (64 MiB physical / TC) and far under v5e/v6e 128 MiB.
    vmem_limit = int(min(48 << 20, max(32 << 20, vmem_needed + (4 << 20))))

    flops = 2 * Ep * Bp * INp * OUTp
    bytes_accessed = (
        x_p.size * in_isz
        + w_p.size * in_isz
        + b_p.size * b_p.dtype.itemsize
        + Ep * Bp * OUTp * out_isz
    )

    if multi_k:
        grid = (n_eblk, Bp // tb, OUTp // tn, n_k)
        in_specs = [
            pl.BlockSpec((eb, tb, tk), lambda e, i, j, k: (e, i, k)),
            pl.BlockSpec((eb, tk, tn), lambda e, i, j, k: (e, k, j)),
            pl.BlockSpec((eb, 1, tn), lambda e, i, j, k: (e, 0, j)),
        ]
        out_specs = pl.BlockSpec((eb, tb, tn), lambda e, i, j, k: (e, i, j))
        dims = ("parallel", "parallel", "parallel", "arbitrary")
        if out_dtype == jnp.float32:
            kernel = _ensemble_fc_kernel_multi_k_f32
            scratch = []
        else:
            kernel = _ensemble_fc_kernel_multi_k_acc
            scratch = [pltpu.VMEM((eb, tb, tn), jnp.float32)]
    else:
        # Single k step: no accumulator / zero-init / epilogue copy at all.
        grid = (n_eblk, Bp // tb, OUTp // tn)
        in_specs = [
            pl.BlockSpec((eb, tb, tk), lambda e, i, j: (e, i, 0)),
            pl.BlockSpec((eb, tk, tn), lambda e, i, j: (e, 0, j)),
            pl.BlockSpec((eb, 1, tn), lambda e, i, j: (e, 0, j)),
        ]
        out_specs = pl.BlockSpec((eb, tb, tn), lambda e, i, j: (e, i, j))
        dims = ("parallel", "parallel", "parallel")
        kernel = _ensemble_fc_kernel_single_k
        scratch = []

    out_p = pl.pallas_call(
        kernel,
        out_shape=jax.ShapeDtypeStruct((Ep, Bp, OUTp), out_dtype),
        grid_spec=pltpu.PrefetchScalarGridSpec(
            num_scalar_prefetch=0,
            grid=grid,
            in_specs=in_specs,
            out_specs=out_specs,
            scratch_shapes=scratch,
        ),
        compiler_params=pltpu.CompilerParams(
            dimension_semantics=dims,
            vmem_limit_bytes=vmem_limit,
        ),
        cost_estimate=pl.CostEstimate(
            flops=flops, transcendentals=0, bytes_accessed=bytes_accessed
        ),
    )(x_p, w_p, b_p)

    return out_p[:E, :B, :OUT]


@functools.partial(jax.jit, static_argnames=("use_bf16_matmul",))
def ensemble_fc(x, weight, bias, *, use_bf16_matmul=False):
    """x: [E, B, IN], weight: [E, IN, OUT], bias: [E, OUT] -> [E, B, OUT]."""
    E, B, IN = x.shape
    Ew, INw, OUT = weight.shape
    assert (Ew, INw) == (E, IN), (weight.shape, x.shape)
    assert bias.shape == (E, OUT), bias.shape

    out_dtype = x.dtype
    if use_bf16_matmul:
        # Native-rate MXU + halved matmul HBM bytes; accumulation stays f32.
        x = x.astype(jnp.bfloat16)
        weight = weight.astype(jnp.bfloat16)

    total_bytes = (
        x.size * x.dtype.itemsize
        + weight.size * weight.dtype.itemsize
        + bias.size * bias.dtype.itemsize
        + E * B * OUT * jnp.dtype(out_dtype).itemsize
    )
    if E <= 16 and total_bytes <= (4 << 20):
        return _small_path(x, weight, bias, out_dtype)
    return _general_path(x, weight, bias, out_dtype)


if __name__ == "__main__":
    key = jax.random.PRNGKey(0)
    kx, kw, kb, kx2, kw2, kb2 = jax.random.split(key, 6)

    # Small shapes consistent with EnsembleFC's forward:
    # ensemble_size=4, batch=8, in_features=32, out_features=32.
    E, B, IN, OUT = 4, 8, 32, 32
    x = jax.random.normal(kx, (E, B, IN), dtype=jnp.float32)
    # Deterministic synthetic parameters (module __init__ only defines shapes).
    weight = jax.random.normal(kw, (E, IN, OUT), dtype=jnp.float32) * 0.1
    bias = jax.random.normal(kb, (E, OUT), dtype=jnp.float32) * 0.1

    out = jax.block_until_ready(ensemble_fc(x, weight, bias))
    ref = (
        jnp.einsum("ebi,eio->ebo", x, weight, precision=jax.lax.Precision.HIGHEST)
        + bias[:, None, :]
    )
    assert out.shape == (E, B, OUT)
    assert jnp.allclose(out, ref, atol=5e-3, rtol=5e-3), float(jnp.abs(out - ref).max())

    # Also exercise the general padded/tiled multi-k-step path at a modest size.
    E2, B2, IN2, OUT2 = 4, 48, 2304, 320
    x2 = jax.random.normal(kx2, (E2, B2, IN2), dtype=jnp.float32)
    weight2 = jax.random.normal(kw2, (E2, IN2, OUT2), dtype=jnp.float32) * 0.05
    bias2 = jax.random.normal(kb2, (E2, OUT2), dtype=jnp.float32) * 0.05

    out2 = jax.block_until_ready(ensemble_fc(x2, weight2, bias2))
    ref2 = (
        jnp.einsum("ebi,eio->ebo", x2, weight2, precision=jax.lax.Precision.HIGHEST)
        + bias2[:, None, :]
    )
    assert out2.shape == (E2, B2, OUT2)
    assert jnp.allclose(out2, ref2, atol=1e-2, rtol=1e-2), float(jnp.abs(out2 - ref2).max())

    print("KERNEL_OK")
</pallas_src>

<mosaic_0001>
module attributes {stable_mosaic.version = 11 : i64} {
  func.func @_ensemble_fc_kernel_single_k(%arg0: memref<4x8x32xf32, #tpu.memory_space<vmem>>, %arg1: memref<4x32x32xf32, #tpu.memory_space<vmem>>, %arg2: memref<4x1x32xf32, #tpu.memory_space<vmem>>, %arg3: memref<4x8x32xf32, #tpu.memory_space<vmem>>) attributes {dimension_semantics = [], scalar_prefetch = 0 : i64, scratch_operands = 0 : i64, tpu.core_type = #tpu.core_type<tc>} {
    %c0 = arith.constant 0 : index
    %c0_0 = arith.constant 0 : index
    %c0_1 = arith.constant 0 : index
    %0 = vector.load %arg0[%c0, %c0_0, %c0_1] : memref<4x8x32xf32, #tpu.memory_space<vmem>>, vector<1x8x32xf32>
    %1 = vector.shape_cast %0 : vector<1x8x32xf32> to vector<8x32xf32>
    %c0_2 = arith.constant 0 : index
    %c0_3 = arith.constant 0 : index
    %c0_4 = arith.constant 0 : index
    %2 = vector.load %arg1[%c0_2, %c0_3, %c0_4] : memref<4x32x32xf32, #tpu.memory_space<vmem>>, vector<1x32x32xf32>
    %3 = vector.shape_cast %2 : vector<1x32x32xf32> to vector<32x32xf32>
    %cst = arith.constant dense<0.000000e+00> : vector<8x32xf32>
    %4 = tpu.matmul %1, %3, %cst {dimension_numbers = #tpu.dot_dimension_numbers<[1], [0], [0], [1], [0, 0, 1, 1], [], []>} : vector<8x32xf32>, vector<32x32xf32>, vector<8x32xf32> -> vector<8x32xf32>
    %c0_5 = arith.constant 0 : index
    %c0_6 = arith.constant 0 : index
    %c0_7 = arith.constant 0 : index
    %5 = vector.load %arg2[%c0_5, %c0_6, %c0_7] : memref<4x1x32xf32, #tpu.memory_space<vmem>>, vector<1x1x32xf32>
    %6 = vector.shape_cast %5 : vector<1x1x32xf32> to vector<1x32xf32>
    %7 = vector.broadcast %6 : vector<1x32xf32> to vector<8x32xf32>
    %8 = arith.addf %4, %7 : vector<8x32xf32>
    %c0_8 = arith.constant 0 : index
    %c0_9 = arith.constant 0 : index
    %c0_10 = arith.constant 0 : index
    %9 = vector.load %arg3[%c0_8, %c0_9, %c0_10] : memref<4x8x32xf32, #tpu.memory_space<vmem>>, vector<1x8x32xf32>
    %10 = vector.shape_cast %9 : vector<1x8x32xf32> to vector<8x32xf32>
    %11 = vector.shape_cast %8 : vector<8x32xf32> to vector<1x8x32xf32>
    tpu.vector_store %arg3[%c0_8, %c0_9, %c0_10], %11 {strides = array<i32>} : memref<4x8x32xf32, #tpu.memory_space<vmem>>, vector<1x8x32xf32>,
    %c1 = arith.constant 1 : index
    %c0_11 = arith.constant 0 : index
    %c0_12 = arith.constant 0 : index
    %12 = vector.load %arg0[%c1, %c0_11, %c0_12] : memref<4x8x32xf32, #tpu.memory_space<vmem>>, vector<1x8x32xf32>
    %13 = vector.shape_cast %12 : vector<1x8x32xf32> to vector<8x32xf32>
    %c1_13 = arith.constant 1 : index
    %c0_14 = arith.constant 0 : index
    %c0_15 = arith.constant 0 : index
    %14 = vector.load %arg1[%c1_13, %c0_14, %c0_15] : memref<4x32x32xf32, #tpu.memory_space<vmem>>, vector<1x32x32xf32>
    %15 = vector.shape_cast %14 : vector<1x32x32xf32> to vector<32x32xf32>
    %cst_16 = arith.constant dense<0.000000e+00> : vector<8x32xf32>
    %16 = tpu.matmul %13, %15, %cst_16 {dimension_numbers = #tpu.dot_dimension_numbers<[1], [0], [0], [1], [0, 0, 1, 1], [], []>} : vector<8x32xf32>, vector<32x32xf32>, vector<8x32xf32> -> vector<8x32xf32>
    %c1_17 = arith.constant 1 : index
    %c0_18 = arith.constant 0 : index
    %c0_19 = arith.constant 0 : index
    %17 = vector.load %arg2[%c1_17, %c0_18, %c0_19] : memref<4x1x32xf32, #tpu.memory_space<vmem>>, vector<1x1x32xf32>
    %18 = vector.shape_cast %17 : vector<1x1x32xf32> to vector<1x32xf32>
    %19 = vector.broadcast %18 : vector<1x32xf32> to vector<8x32xf32>
    %20 = arith.addf %16, %19 : vector<8x32xf32>
    %c1_20 = arith.constant 1 : index
    %c0_21 = arith.constant 0 : index
    %c0_22 = arith.constant 0 : index
    %21 = vector.load %arg3[%c1_20, %c0_21, %c0_22] : memref<4x8x32xf32, #tpu.memory_space<vmem>>, vector<1x8x32xf32>
    %22 = vector.shape_cast %21 : vector<1x8x32xf32> to vector<8x32xf32>
    %23 = vector.shape_cast %20 : vector<8x32xf32> to vector<1x8x32xf32>
    tpu.vector_store %arg3[%c1_20, %c0_21, %c0_22], %23 {strides = array<i32>} : memref<4x8x32xf32, #tpu.memory_space<vmem>>, vector<1x8x32xf32>,
    %c2 = arith.constant 2 : index
    %c0_23 = arith.constant 0 : index
    %c0_24 = arith.constant 0 : index
    %24 = vector.load %arg0[%c2, %c0_23, %c0_24] : memref<4x8x32xf32, #tpu.memory_space<vmem>>, vector<1x8x32xf32>
    %25 = vector.shape_cast %24 : vector<1x8x32xf32> to vector<8x32xf32>
    %c2_25 = arith.constant 2 : index
    %c0_26 = arith.constant 0 : index
    %c0_27 = arith.constant 0 : index
    %26 = vector.load %arg1[%c2_25, %c0_26, %c0_27] : memref<4x32x32xf32, #tpu.memory_space<vmem>>, vector<1x32x32xf32>
    %27 = vector.shape_cast %26 : vector<1x32x32xf32> to vector<32x32xf32>
    %cst_28 = arith.constant dense<0.000000e+00> : vector<8x32xf32>
    %28 = tpu.matmul %25, %27, %cst_28 {dimension_numbers = #tpu.dot_dimension_numbers<[1], [0], [0], [1], [0, 0, 1, 1], [], []>} : vector<8x32xf32>, vector<32x32xf32>, vector<8x32xf32> -> vector<8x32xf32>
    %c2_29 = arith.constant 2 : index
    %c0_30 = arith.constant 0 : index
    %c0_31 = arith.constant 0 : index
    %29 = vector.load %arg2[%c2_29, %c0_30, %c0_31] : memref<4x1x32xf32, #tpu.memory_space<vmem>>, vector<1x1x32xf32>
    %30 = vector.shape_cast %29 : vector<1x1x32xf32> to vector<1x32xf32>
    %31 = vector.broadcast %30 : vector<1x32xf32> to vector<8x32xf32>
    %32 = arith.addf %28, %31 : vector<8x32xf32>
    %c2_32 = arith.constant 2 : index
    %c0_33 = arith.constant 0 : index
    %c0_34 = arith.constant 0 : index
    %33 = vector.load %arg3[%c2_32, %c0_33, %c0_34] : memref<4x8x32xf32, #tpu.memory_space<vmem>>, vector<1x8x32xf32>
    %34 = vector.shape_cast %33 : vector<1x8x32xf32> to vector<8x32xf32>
    %35 = vector.shape_cast %32 : vector<8x32xf32> to vector<1x8x32xf32>
    tpu.vector_store %arg3[%c2_32, %c0_33, %c0_34], %35 {strides = array<i32>} : memref<4x8x32xf32, #tpu.memory_space<vmem>>, vector<1x8x32xf32>,
    %c3 = arith.constant 3 : index
    %c0_35 = arith.constant 0 : index
    %c0_36 = arith.constant 0 : index
    %36 = vector.load %arg0[%c3, %c0_35, %c0_36] : memref<4x8x32xf32, #tpu.memory_space<vmem>>, vector<1x8x32xf32>
    %37 = vector.shape_cast %36 : vector<1x8x32xf32> to vector<8x32xf32>
    %c3_37 = arith.constant 3 : index
    %c0_38 = arith.constant 0 : index
    %c0_39 = arith.constant 0 : index
    %38 = vector.load %arg1[%c3_37, %c0_38, %c0_39] : memref<4x32x32xf32, #tpu.memory_space<vmem>>, vector<1x32x32xf32>
    %39 = vector.shape_cast %38 : vector<1x32x32xf32> to vector<32x32xf32>
    %cst_40 = arith.constant dense<0.000000e+00> : vector<8x32xf32>
    %40 = tpu.matmul %37, %39, %cst_40 {dimension_numbers = #tpu.dot_dimension_numbers<[1], [0], [0], [1], [0, 0, 1, 1], [], []>} : vector<8x32xf32>, vector<32x32xf32>, vector<8x32xf32> -> vector<8x32xf32>
    %c3_41 = arith.constant 3 : index
    %c0_42 = arith.constant 0 : index
    %c0_43 = arith.constant 0 : index
    %41 = vector.load %arg2[%c3_41, %c0_42, %c0_43] : memref<4x1x32xf32, #tpu.memory_space<vmem>>, vector<1x1x32xf32>
    %42 = vector.shape_cast %41 : vector<1x1x32xf32> to vector<1x32xf32>
    %43 = vector.broadcast %42 : vector<1x32xf32> to vector<8x32xf32>
    %44 = arith.addf %40, %43 : vector<8x32xf32>
    %c3_44 = arith.constant 3 : index
    %c0_45 = arith.constant 0 : index
    %c0_46 = arith.constant 0 : index
    %45 = vector.load %arg3[%c3_44, %c0_45, %c0_46] : memref<4x8x32xf32, #tpu.memory_space<vmem>>, vector<1x8x32xf32>
    %46 = vector.shape_cast %45 : vector<1x8x32xf32> to vector<8x32xf32>
    %47 = vector.shape_cast %44 : vector<8x32xf32> to vector<1x8x32xf32>
    tpu.vector_store %arg3[%c3_44, %c0_45, %c0_46], %47 {strides = array<i32>} : memref<4x8x32xf32, #tpu.memory_space<vmem>>, vector<1x8x32xf32>,
    return
  }
}

</mosaic_0001>

<bundles_post_ra>
// kernel: ensemble_fc.1
= control target key start
LH: loop header
LB: loop body
LE: loop exit
PB: predicated region body
PF: predicated region fallthrough
CT: control target
= control target key end

     0   :  { %8 = vsyncpa [#allocation3], 0  ;;  %s694_s0 = inlined_call_operand.hbm [shape: f32[4,8,32], index: 0, kind: input, shape index: {}]   ;;  %s695_s1 = inlined_call_operand.hbm [shape: f32[4,32,32], index: 1, kind: input, shape index: {}]   ;;  %s696_s2 = inlined_call_operand.vmem [shape: f32[4,1,32], index: 2, kind: input, shape index: {}]   ;;  %s697_s3 = inlined_call_operand.hbm [shape: f32[4,8,32], index: 3, kind: output, shape index: {}]  }
   0x1   :  { %9 = vsyncpa [#allocation6], 0 }
   0x2   :  { %10 = vsyncpa [#allocation4], 0  ;;  %s597_s12 = smov [#allocation2]   ;;  %s525_s16 = scalar_lea.hbm %s694_s0, 512 }
   0x3   :  { %s16_s13 = sshll.u32 %s597_s12, 4  ;;  %p526_p0 = scmp.ne.s32.totalorder %s694_s0, %s525_s16  ;;  %s17_s13 = int_to_ptr.vmem [resolvable:$true] %s16_s13 }
   0x4   :  { %p529_p1 = scmp.lt.u32.totalorder %s525_s16, %s694_s0 }
   0x6   :  { %p531_p2 = pnand %p529_p1, %p526_p0 }
   0x8   :  { %534 = shalt.err (!%p531_p2)
}
   0x9   :  { %s535_s21 = scalar_lea.vmem %s17_s13, 512  ;;  %p540_p4 = scmp.lt.s32.totalorder %s17_s13, %s17_s13 }
   0xa   :  { %p536_p3 = scmp.ne.s32.totalorder %s17_s13, %s535_s21  ;;  %p541_p5 = scmp.lt.s32.totalorder %s535_s21, %s535_s21 }
   0xc   :  { %p542_p6 = por %p541_p5, %p540_p4 }
   0xe   :  { %p543_p7 = pnand %p542_p6, %p536_p3 }
  0x10   :  { %546 = shalt.err (!%p543_p7)
}
  0x11   :  { %s598_s22 = smov 128   ;;  %s599_s23 = smov 8  }
  0x12   :  { %22 = dma.hbm_to_vmem [thread:$0]  %s694_s0, 512, %s17_s13, [#allocation3], %s598_s22, %s598_s22, %s599_s23  }
  0x13   :  { %s600_s26 = smov [#allocation5]   ;;  %s547_s30 = scalar_lea.hbm %s695_s1, 2048 }
  0x14   :  { %s28_s27 = sshll.u32 %s600_s26, 4  ;;  %p548_p8 = scmp.ne.s32.totalorder %s695_s1, %s547_s30  ;;  %s29_s27 = int_to_ptr.vmem [resolvable:$true] %s28_s27 }
  0x15   :  { %p551_p9 = scmp.lt.u32.totalorder %s547_s30, %s695_s1 }
  0x17   :  { %p553_p10 = pnand %p551_p9, %p548_p8 }
  0x19   :  { %556 = shalt.err (!%p553_p10)
}
  0x1a   :  { %s557_s8 = scalar_lea.vmem %s29_s27, 2048  ;;  %p562_p12 = scmp.lt.s32.totalorder %s29_s27, %s29_s27 }
  0x1b   :  { %p558_p11 = scmp.ne.s32.totalorder %s29_s27, %s557_s8  ;;  %p563_p13 = scmp.lt.s32.totalorder %s557_s8, %s557_s8 }
  0x1d   :  { %p564_p0 = por %p563_p13, %p562_p12 }
  0x1f   :  { %p565_p1 = pnand %p564_p0, %p558_p11 }
  0x21   :  { %568 = shalt.err (!%p565_p1)
}
  0x22   :  { %34 = dma.hbm_to_vmem [thread:$0]  %s695_s1, 2048, %s29_s27, [#allocation6], %s598_s22, %s598_s22, %s599_s23  }
  0x23   :  { %591 = dma.done.wait [#allocation3], 512  }
  0x24   :  { %592 = vsyncadd [#allocation3], 4294966784 }
  0x25   :  { %593 = dma.done.wait [#allocation6], 2048  }
  0x26   :  { %594 = vsyncadd [#allocation6], 4294965248  ;;  %v601_v0 = vmov 0.0|0.0   ;;  %vm602_vm0 = vmmov 0   ;;  %v603_v1 = vmov 0.0   ;;  %v44_v2 = vld [vmem:[#allocation5] sm:$0xff] }
  0x27   :  { %493 = vmatprep.subr.bf16.mxu0 %v601_v0  ;;  %499 = vmatprep.subr.bf16.mxu1 %v601_v0  ;;  %v45_v3 = vld [vmem:[#allocation5 + $0x8] sm:$0xff]  ;;  %v133_v4 = vld [vmem:[#allocation5 + $0x20] sm:$0xff]  ;;  %v46_v7 = vld [vmem:[#allocation5 + $0x10] sm:$0xff]  ;;  %vm55_vm1 = vcmask 261120   ;;  %s604_s17 = smov [#allocation7]  }
  0x28   :  { %457 = vmatprep.mubr.msk.f32.mxu0 %vm602_vm0, %v603_v1  ;;  %468 = vmatprep.mubr.msk.f32.mxu1 %vm602_vm0, %v603_v1  ;;  %v494_v5 = vpack.c.bf16 %v45_v3, %v44_v2  ;;  %v134_v6 = vld [vmem:[#allocation5 + $0x28] sm:$0xff]  ;;  %v47_v8 = vld [vmem:[#allocation5 + $0x18] sm:$0xff]  ;;  %v135_v10 = vld [vmem:[#allocation5 + $0x30] sm:$0xff]  ;;  %s405_s18 = sshll.u32 %s604_s17, 4  ;;  %s406_s18 = int_to_ptr.vmem [resolvable:$true] %s405_s18 }
  0x29   :  { %v500_v9 = vpack.c.bf16 %v134_v6, %v133_v4  ;;  %v136_v11 = vld [vmem:[#allocation5 + $0x38] sm:$0xff]  ;;  %v497_v12 = vpack.c.bf16 %v47_v8, %v46_v7  ;;  %v223_v14 = vld [vmem:[#allocation5 + $0x40] sm:$0xff]  ;;  %v224_v15 = vld [vmem:[#allocation5 + $0x48] sm:$0xff]  ;;  %s569_s19 = scalar_lea.vmem %s406_s18, 512  ;;  %p574_p3 = scmp.lt.s32.totalorder %s406_s18, %s406_s18 }
  0x2a   :  { %495 = vmatpush3.bf16.msra.mxu0 %v494_v5  ;;  %v503_v13 = vpack.c.bf16 %v136_v11, %v135_v10  ;;  %v313_v16 = vld [vmem:[#allocation5 + $0x60] sm:$0xff]  ;;  %v314_v17 = vld [vmem:[#allocation5 + $0x68] sm:$0xff]  ;;  %v506_v19 = vpack.c.bf16 %v224_v15, %v223_v14  ;;  %v225_v22 = vld [vmem:[#allocation5 + $0x50] sm:$0xff]  ;;  %p570_p2 = scmp.ne.s32.totalorder %s406_s18, %s569_s19  ;;  %p575_p4 = scmp.lt.s32.totalorder %s569_s19, %s569_s19 }
  0x2b   :  { %501 = vmatpush3.bf16.msra.mxu1 %v500_v9  ;;  %496 = vmatprep.subr.bf16.mxu0 %v601_v0  ;;  %v43_v18 = vld [vmem:[#allocation2] sm:$0xff]  ;;  %v131_v20 = vld [vmem:[#allocation2 + $0x8] sm:$0xff]  ;;  %v512_v21 = vpack.c.bf16 %v314_v17, %v313_v16  ;;  %v226_v23 = vld [vmem:[#allocation5 + $0x58] sm:$0xff] }
  0x2c   :  { %502 = vmatprep.subr.bf16.mxu1 %v601_v0  ;;  %v315_v24 = vld [vmem:[#allocation5 + $0x70] sm:$0xff]  ;;  %v316_v25 = vld [vmem:[#allocation5 + $0x78] sm:$0xff]  ;;  %v509_v26 = vpack.c.bf16 %v226_v23, %v225_v22  ;;  %v418_v30 = vld [vmem:[%s696_s2] ss:$0 sm:$0xff]  ;;  %p576_p5 = por %p575_p4, %p574_p3 }
  0x2d   :  { %v515_v27 = vpack.c.bf16 %v316_v25, %v315_v24  ;;  %v221_v28 = vld [vmem:[#allocation2 + $0x10] sm:$0xff]  ;;  %v311_v29 = vld [vmem:[#allocation2 + $0x18] sm:$0xff]  ;;  %v421_v31 = vld [vmem:[%s696_s2 + $0x1] ss:$0 sm:$0xff] }
  0x2e   :  { %498 = vmatpush3.bf16.msra.mxu0 %v497_v12  ;;  %v424_v38 = vld [vmem:[%s696_s2 + $0x2] ss:$0 sm:$0xff]  ;;  %v427_v39 = vld [vmem:[%s696_s2 + $0x3] ss:$0 sm:$0xff]  ;;  %p577_p6 = pnand %p576_p5, %p570_p2 }
  0x2f   :  { %504 = vmatpush3.bf16.msra.mxu1 %v503_v13  ;;  %505 = vmatprep.subr.bf16.mxu0 %v601_v0 }
  0x30   :  { %511 = vmatprep.subr.bf16.mxu1 %v601_v0 }
  0x31   :  { %458 = vmatmul.mubr.msk.f32.vlgmr.msra.gmra.mrb[0].mxu0 %vm55_vm1, %v43_v18 }
  0x32   :  { %469 = vmatmul.mubr.msk.f32.vlgmr.msra.gmra.mrb[0].mxu1 %vm55_vm1, %v131_v20  ;;  %507 = vmatpush3.bf16.msra.mxu0 %v506_v19 }
  0x33   :  { %513 = vmatpush3.bf16.msra.mxu1 %v512_v21  ;;  %508 = vmatprep.subr.bf16.mxu0 %v601_v0 }
  0x34   :  { %514 = vmatprep.subr.bf16.mxu1 %v601_v0  ;;  %479 = vmatprep.mubr.msk.f32.mxu0 %vm602_vm0, %v603_v1 }
  0x35   :  { %490 = vmatprep.mubr.msk.f32.mxu1 %vm602_vm0, %v603_v1 }
  0x36   :  { %510 = vmatpush3.bf16.msra.mxu0 %v509_v26 }
  0x37   :  { %516 = vmatpush3.bf16.msra.mxu1 %v515_v27 }
  0x39   :  { %480 = vmatmul.mubr.msk.f32.vlgmr.msra.gmra.mrb[2].mxu0 %vm55_vm1, %v221_v28 }
  0x3a   :  { %491 = vmatmul.mubr.msk.f32.vlgmr.msra.gmra.mrb[2].mxu1 %vm55_vm1, %v311_v29 }
 0x104   :  { %v125_v32 = vpop.f32.mrb[0].mxu0 }
 0x105   :  { %v126_v33 = vadd.f32 %v418_v30, %v125_v32  ;;  %v214_v34 = vpop.f32.mrb[0].mxu1  ;;  %v459_v35 = vpop.f32.mrb[1].mxu0 }
 0x106   :  { %v215_v36 = vadd.f32 %v421_v31, %v214_v34  ;;  %v470_v37 = vpop.f32.mrb[1].mxu1 }
 0x107   :  { %129 = vst.msk [vmem:[#allocation7] sm:$0xff] %vm55_vm1, %v126_v33 }
 0x108   :  { %219 = vst.msk [vmem:[#allocation7 + $0x8] sm:$0xff] %vm55_vm1, %v215_v36 }
 0x10c   :  { %v304_v40 = vpop.f32.mrb[2].mxu0 }
 0x10d   :  { %v305_v41 = vadd.f32 %v424_v38, %v304_v40  ;;  %v394_v42 = vpop.f32.mrb[2].mxu1  ;;  %v481_v43 = vpop.f32.mrb[3].mxu0 }
 0x10e   :  { %v395_v44 = vadd.f32 %v427_v39, %v394_v42  ;;  %v492_v45 = vpop.f32.mrb[3].mxu1 }
 0x10f   :  { %309 = vst.msk [vmem:[#allocation7 + $0x10] sm:$0xff] %vm55_vm1, %v305_v41 }
 0x110   :  { %399 = vst.msk [vmem:[#allocation7 + $0x18] sm:$0xff] %vm55_vm1, %v395_v44 }
 0x111   :  { %580 = shalt.err (!%p577_p6)
}
 0x112   :  { %s581_s21 = scalar_lea.hbm %s697_s3, 512 }
 0x113   :  { %p582_p7 = scmp.ne.s32.totalorder %s697_s3, %s581_s21  ;;  %p585_p8 = scmp.lt.u32.totalorder %s581_s21, %s697_s3 }
 0x115   :  { %p587_p9 = pnand %p585_p8, %p582_p7 }
 0x117   :  { %590 = shalt.err (!%p587_p9)
}
 0x118   :  { %411 = dma.vmem_to_hbm [thread:$0]  %s406_s18, 512, %s697_s3, [#allocation4], %s598_s22, %s598_s22, %s599_s23  }
 0x119   :  { %595 = dma.done.wait [#allocation4], 512  }
 0x11a   :  { %596 = vsyncadd [#allocation4], 4294966784 }
 0x11b   :  { %415 = vsyncpa [#allocation3], 1 }
 0x11c   :  { %416 = vsyncpa [#allocation6], 1 }
 0x11d   :  { %417 = vsyncpa [#allocation4], 1 }

</bundles_post_ra>
